<compile_context>
chip_gen: v5e
topology: v5e:2x2
jax: 0.10.0
libtpu: 0.0.40
codegen_flags: <defaults>
</compile_context>

<pallas_src>
import jax
import jax.numpy as jnp
from jax import lax
from jax.experimental import pallas as pl
from jax.experimental.pallas import tpu as pltpu


# ----------------------------- helpers --------------------------------------

def _lane_tile(L, cap=32768):
    # Largest power-of-two multiple of 128 (<= cap) dividing L; else full L.
    t = cap
    while t >= 128:
        if L % t == 0:
            return t
        t //= 2
    return L


def _query_tile(L):
    for t in (512, 384, 256, 128):
        if L % t == 0:
            return t
    return L


def _compiler_params(dims):
    kwargs = dict(dimension_semantics=dims)
    try:
        # v7x: 64 MiB * 3/4 = 48 MiB; v5e/v6e: capped at 96 MiB of 128 MiB.
        cap = int(pltpu.get_tpu_info().vmem_capacity_bytes)
        kwargs["vmem_limit_bytes"] = min((cap * 3) // 4, 96 * 1024 * 1024)
    except Exception:
        pass
    return pltpu.CompilerParams(**kwargs)


# ----------------------------- Pallas kernels ------------------------------

def _conv1x1_kernel(x_ref, w_ref, b_ref, o_ref):
    # x: (1, C, T)   w: (C, C)   b: (C, 1)   ->   o: (1, C, T)
    o_ref[0] = (jnp.dot(w_ref[...], x_ref[0],
                        preferred_element_type=jnp.float32) + b_ref[...])


def _fuse_polar_kernel(x_ref, w_ref, b_ref, re_ref, im_ref):
    # x: (1, 2C, T) = [mag; pha] stacked on channels.
    # w: (2, 2C, 2C) block-diagonal [amp | pha] weights for conv1 / conv2.
    # b: (2, 2C, 1)  stacked biases.
    C = re_ref.shape[1]
    x2 = x_ref[0]                                                     # (2C, T)
    h = jnp.dot(w_ref[0], x2, preferred_element_type=jnp.float32) + b_ref[0]
    h = jnp.maximum(h, 0.1 * h)                                       # LeakyReLU(0.1)
    y = jnp.dot(w_ref[1], h, preferred_element_type=jnp.float32) + b_ref[1]
    Mag = y[:C]
    Pha = y[C:]
    re_ref[0] = Mag * jnp.cos(Pha)
    im_ref[0] = Mag * jnp.sin(Pha)


def _attn_polar_kernel(x_ref, wq_ref, wkv_ref, wt_ref, bt_ref, re_ref, im_ref):
    # x:   (1, 2C, HW)  [mag; pha], resident across query tiles.
    # wq:  (2C, 2C)     block-diag q projections (scale pre-folded).
    # wkv: (4C, 2C)     block-diag [k; v] projections per branch.
    # wt:  (2, 2, C, C) per-branch (to_out, post) conv weights.
    # bt:  (2, 2, C, 1) per-branch (to_out, post) conv biases.
    # out: (1, C, TQ)   re / im for the current query tile.
    C = re_ref.shape[1]
    TQ = re_ref.shape[2]
    HW = x_ref.shape[2]
    q0 = pl.multiple_of(pl.program_id(1) * TQ, TQ)

    x_full = x_ref[0]                                                 # (2C, HW)
    x_t = x_ref[0, :, pl.ds(q0, TQ)]                                  # (2C, TQ)

    kv = jnp.dot(wkv_ref[...], x_full, preferred_element_type=jnp.float32)  # (4C, HW)
    qs = jnp.dot(wq_ref[...], x_t, preferred_element_type=jnp.float32)      # (2C, TQ)
    ones_row = jnp.ones((1, HW), jnp.float32)

    def branch(bi):
        q = qs[bi * C:(bi + 1) * C]                                   # (C, TQ)
        k = kv[2 * bi * C:(2 * bi + 1) * C]                           # (C, HW)
        v = kv[(2 * bi + 1) * C:(2 * bi + 2) * C]                     # (C, HW)
        # s[i, j] = sum_c q[c, i] * k[c, j]   (q^T k, no explicit transpose)
        s = lax.dot_general(q, k, (((0,), (0,)), ((), ())),
                            preferred_element_type=jnp.float32)       # (TQ, HW)
        p = jnp.exp(s - jnp.max(s, axis=-1, keepdims=True))           # un-normalized
        # o[c, i] = sum_j v[c, j] * p[i, j]
        o = lax.dot_general(v, p, (((1,), (1,)), ((), ())),
                            preferred_element_type=jnp.float32)       # (C, TQ)
        # row-sums of p via the MXU (ones-row dot) instead of an XLU reduce;
        # normalization deferred onto the tiny (C, TQ) output.
        denom = lax.dot_general(ones_row, p, (((1,), (1,)), ((), ())),
                                preferred_element_type=jnp.float32)   # (1, TQ)
        o = o * pl.reciprocal(denom, approx=False)
        y = jnp.dot(wt_ref[bi, 0], o,
                    preferred_element_type=jnp.float32) + bt_ref[bi, 0]   # to_out
        z = y + x_t[bi * C:(bi + 1) * C]                                  # residual
        return jnp.dot(wt_ref[bi, 1], z,
                       preferred_element_type=jnp.float32) + bt_ref[bi, 1]  # post

    Mag = branch(0)
    Pha = branch(1)
    re_ref[0] = Mag * jnp.cos(Pha)
    im_ref[0] = Mag * jnp.sin(Pha)


# ------------------------------ pallas_call wrappers ------------------------

def post_conv(x, w, b):
    # x: (N, C, L) channel-major; tiled over L (lane-dense stores).
    N, C, L = x.shape
    T = _lane_tile(L)
    x_spec = pl.BlockSpec((1, C, T), lambda n, t: (n, 0, t))
    return pl.pallas_call(
        _conv1x1_kernel,
        out_shape=jax.ShapeDtypeStruct((N, C, L), jnp.float32),
        grid=(N, L // T),
        in_specs=[x_spec,
                  pl.BlockSpec((C, C), lambda n, t: (0, 0)),
                  pl.BlockSpec((C, 1), lambda n, t: (0, 0))],
        out_specs=x_spec,
        compiler_params=_compiler_params(("parallel", "parallel")),
    )(x, w, b.reshape(C, 1))


def fuse_polar(x2, params, C):
    # x2: (N, 2C, L) with mag in rows 0:C and pha in rows C:2C.
    N, C2, L = x2.shape
    T = _lane_tile(L)
    aw1, ab1, aw2, ab2 = params["amp_fuse"]
    pw1, pb1, pw2, pb2 = params["pha_fuse"]
    z = jnp.zeros((C, C), jnp.float32)
    W = jnp.stack([jnp.block([[aw1, z], [z, pw1]]),
                   jnp.block([[aw2, z], [z, pw2]])])                  # (2, 2C, 2C)
    B = jnp.stack([jnp.concatenate([ab1, pb1])[:, None],
                   jnp.concatenate([ab2, pb2])[:, None]])             # (2, 2C, 1)
    x_spec = pl.BlockSpec((1, C2, T), lambda n, t: (n, 0, t))
    o_spec = pl.BlockSpec((1, C, T), lambda n, t: (n, 0, t))
    return pl.pallas_call(
        _fuse_polar_kernel,
        out_shape=(jax.ShapeDtypeStruct((N, C, L), jnp.float32),
                   jax.ShapeDtypeStruct((N, C, L), jnp.float32)),
        grid=(N, L // T),
        in_specs=[x_spec,
                  pl.BlockSpec((2, C2, C2), lambda n, t: (0, 0, 0)),
                  pl.BlockSpec((2, C2, 1), lambda n, t: (0, 0, 0))],
        out_specs=(o_spec, o_spec),
        compiler_params=_compiler_params(("parallel", "parallel")),
    )(x2, W, B)


def attn_polar(x2, params, scale, C):
    # x2: (N, 2C, L) with mag in rows 0:C and pha in rows C:2C.
    N, C2, L = x2.shape
    awq, awk, awv, awo, abo = params["amp_attn"]
    awp, abp = params["amp_post"]
    pwq, pwk, pwv, pwo, pbo = params["pha_attn"]
    pwp, pbp = params["pha_post"]
    z = jnp.zeros((C, C), jnp.float32)
    # q projections with the attention scale folded in (exact for C=4).
    wq2 = jnp.block([[awq * scale, z], [z, pwq * scale]])              # (2C, 2C)
    # stacked k/v projections, block-diagonal across the two branches.
    wkv = jnp.block([[awk, z], [awv, z], [z, pwk], [z, pwv]])          # (4C, 2C)
    # per-branch (to_out, post) weights / biases packed into single operands.
    wtail = jnp.stack([jnp.stack([awo, awp]), jnp.stack([pwo, pwp])])  # (2, 2, C, C)
    btail = jnp.stack([jnp.stack([abo[:, None], abp[:, None]]),
                       jnp.stack([pbo[:, None], pbp[:, None]])])       # (2, 2, C, 1)

    TQ = _query_tile(L)
    x_spec = pl.BlockSpec((1, C2, L), lambda n, q: (n, 0, 0))          # resident K/V source
    o_spec = pl.BlockSpec((1, C, TQ), lambda n, q: (n, 0, q))
    return pl.pallas_call(
        _attn_polar_kernel,
        out_shape=(jax.ShapeDtypeStruct((N, C, L), jnp.float32),
                   jax.ShapeDtypeStruct((N, C, L), jnp.float32)),
        grid=(N, L // TQ),
        in_specs=[x_spec,
                  pl.BlockSpec((2 * C, 2 * C), lambda n, q: (0, 0)),
                  pl.BlockSpec((4 * C, 2 * C), lambda n, q: (0, 0)),
                  pl.BlockSpec((2, 2, C, C), lambda n, q: (0, 0, 0, 0)),
                  pl.BlockSpec((2, 2, C, 1), lambda n, q: (0, 0, 0, 0))],
        out_specs=(o_spec, o_spec),
        compiler_params=_compiler_params(("parallel", "parallel")),
    )(x2, wq2, wkv, wtail, btail)


# ------------------------------ full forward --------------------------------

def freup_forward_pallas(x, params, use_attention):
    N, C, H, W = x.shape
    HW = H * W
    scale = float(C) ** (-0.5)

    fx = jnp.fft.fft2(x)
    mag = jnp.abs(fx).astype(jnp.float32)
    pha = jnp.angle(fx).astype(jnp.float32)
    # channel-major (HW on the lane axis), both branches stacked on channels.
    x2 = jnp.concatenate([mag, pha], axis=1).reshape(N, 2 * C, HW)

    if use_attention:
        re, im = attn_polar(x2, params, scale, C)
    else:
        re, im = fuse_polar(x2, params, C)

    # Periodic 2x2 tiling is layout glue (commutes with the fused pointwise ops).
    re = jnp.tile(re.reshape(N, C, H, W), (1, 1, 2, 2))
    im = jnp.tile(im.reshape(N, C, H, W), (1, 1, 2, 2))
    out_c = jax.lax.complex(re, im)
    output = jnp.abs(jnp.fft.ifft2(out_c)).astype(jnp.float32)        # (N, C, 2H, 2W)

    y = post_conv(output.reshape(N, C, 4 * HW), *params["post"])
    return y.reshape(N, C, 2 * H, 2 * W)


# --------------------------- pure-JAX reference ------------------------------

def ref_conv1x1(x, w, b=None):
    y = jnp.einsum("nchw,oc->nohw", x, w)
    if b is not None:
        y = y + b[None, :, None, None]
    return y


def ref_attention(x, wq, wk, wv, wo, bo, scale):
    b, c, h, w = x.shape
    q = ref_conv1x1(x, wq).reshape(b, c, h * w)
    k = ref_conv1x1(x, wk).reshape(b, c, h * w)
    v = ref_conv1x1(x, wv).reshape(b, c, h * w)
    q = jnp.transpose(q, (0, 2, 1))
    attn = jnp.einsum("bic,bcj->bij", q, k) * scale
    attn = jax.nn.softmax(attn, axis=-1)
    out = jnp.einsum("bij,bjc->bic", attn, jnp.transpose(v, (0, 2, 1)))
    out = jnp.transpose(out, (0, 2, 1)).reshape(b, c, h, w)
    return ref_conv1x1(out, wo, bo)


def reference_forward(x, params, use_attention):
    N, C, H, W = x.shape
    scale = float(C) ** (-0.5)
    fx = jnp.fft.fft2(x)
    mag = jnp.abs(fx)
    pha = jnp.angle(fx)
    if use_attention:
        mag_attn = ref_attention(mag, *params["amp_attn"], scale)
        pha_attn = ref_attention(pha, *params["pha_attn"], scale)
        Mag = ref_conv1x1(mag_attn + mag, *params["amp_post"])
        Pha = ref_conv1x1(pha_attn + pha, *params["pha_post"])
    else:
        w1, b1, w2, b2 = params["amp_fuse"]
        h = ref_conv1x1(mag, w1, b1)
        h = jnp.where(h >= 0, h, 0.1 * h)
        Mag = ref_conv1x1(h, w2, b2)
        w1, b1, w2, b2 = params["pha_fuse"]
        h = ref_conv1x1(pha, w1, b1)
        h = jnp.where(h >= 0, h, 0.1 * h)
        Pha = ref_conv1x1(h, w2, b2)
    amp_f = jnp.tile(Mag, (1, 1, 2, 2))
    pha_f = jnp.tile(Pha, (1, 1, 2, 2))
    out_c = jax.lax.complex(amp_f * jnp.cos(pha_f), amp_f * jnp.sin(pha_f))
    output = jnp.abs(jnp.fft.ifft2(out_c))
    return ref_conv1x1(output, *params["post"])


# ------------------------------ parameters ----------------------------------

def init_params(key, C, use_attention):
    keys = jax.random.split(key, 24)

    def w(k):
        return 0.1 * jax.random.normal(k, (C, C), jnp.float32)

    def b(k):
        return 0.1 * jax.random.normal(k, (C,), jnp.float32)

    p = {
        "amp_fuse": (w(keys[0]), b(keys[1]), w(keys[2]), b(keys[3])),
        "pha_fuse": (w(keys[4]), b(keys[5]), w(keys[6]), b(keys[7])),
        "post": (w(keys[8]), b(keys[9])),
    }
    if use_attention:
        p["amp_attn"] = (w(keys[10]), w(keys[11]), w(keys[12]), w(keys[13]), b(keys[14]))
        p["pha_attn"] = (w(keys[15]), w(keys[16]), w(keys[17]), w(keys[18]), b(keys[19]))
        p["amp_post"] = (w(keys[20]), b(keys[21]))
        p["pha_post"] = (w(keys[22]), b(keys[23]))
    return p


# --------------------------------- main --------------------------------------

if __name__ == "__main__":
    key = jax.random.PRNGKey(0)
    kx, kp = jax.random.split(key)

    cases = (
        ((2, 4, 16, 16), False),   # fuse path
        ((2, 4, 16, 16), True),    # attention path (single query tile)
        ((1, 4, 32, 32), True),    # attention path (two query tiles, TQ=512)
    )

    ok = True
    for (N, C, H, W), use_attention in cases:
        x = jax.random.normal(kx, (N, C, H, W), jnp.float32)
        params = init_params(kp, C, use_attention)
        y = jax.block_until_ready(freup_forward_pallas(x, params, use_attention))
        y_ref = reference_forward(x, params, use_attention)
        err = float(jnp.max(jnp.abs(y - y_ref)))
        tol = 1e-4 * (1.0 + float(jnp.max(jnp.abs(y_ref))))
        ok = ok and (y.shape == (N, C, 2 * H, 2 * W)) and (err < tol)

    print("KERNEL_OK" if ok else "KERNEL_MISMATCH")
</pallas_src>

<mosaic_0001>
module attributes {stable_mosaic.version = 11 : i64} {
  func.func @_fuse_polar_kernel(%arg0: i32, %arg1: i32, %arg2: memref<1x8x256xf32, #tpu.memory_space<vmem>>, %arg3: memref<2x8x8xf32, #tpu.memory_space<vmem>>, %arg4: memref<2x8x1xf32, #tpu.memory_space<vmem>>, %arg5: memref<1x4x256xf32, #tpu.memory_space<vmem>>, %arg6: memref<1x4x256xf32, #tpu.memory_space<vmem>>) attributes {dimension_semantics = [#tpu.dimension_semantics<parallel>, #tpu.dimension_semantics<parallel>], iteration_bounds = array<i64: 2, 1>, scalar_prefetch = 0 : i64, scratch_operands = 0 : i64, tpu.core_type = #tpu.core_type<tc>, window_params = [{transform_indices = @transform_0, window_bounds = array<i64: 1, 8, 256>}, {pipeline_mode = #tpu.pipeline_mode<synchronous>, transform_indices = @transform_1, window_bounds = array<i64: 2, 8, 8>}, {pipeline_mode = #tpu.pipeline_mode<synchronous>, transform_indices = @transform_2, window_bounds = array<i64: 2, 8, 1>}, {transform_indices = @transform_3, window_bounds = array<i64: 1, 4, 256>}, {transform_indices = @transform_4, window_bounds = array<i64: 1, 4, 256>}]} {
    %c0 = arith.constant 0 : index
    %c0_0 = arith.constant 0 : index
    %c0_1 = arith.constant 0 : index
    %0 = vector.load %arg2[%c0, %c0_0, %c0_1] : memref<1x8x256xf32, #tpu.memory_space<vmem>>, vector<1x8x256xf32>
    %1 = vector.shape_cast %0 : vector<1x8x256xf32> to vector<8x256xf32>
    %c0_2 = arith.constant 0 : index
    %c0_3 = arith.constant 0 : index
    %c0_4 = arith.constant 0 : index
    %2 = vector.load %arg3[%c0_2, %c0_3, %c0_4] : memref<2x8x8xf32, #tpu.memory_space<vmem>>, vector<1x8x8xf32>
    %3 = vector.shape_cast %2 : vector<1x8x8xf32> to vector<8x8xf32>
    %cst = arith.constant dense<0.000000e+00> : vector<8x256xf32>
    %4 = tpu.matmul %3, %1, %cst {dimension_numbers = #tpu.dot_dimension_numbers<[1], [0], [0], [1], [0, 0, 1, 1], [], []>} : vector<8x8xf32>, vector<8x256xf32>, vector<8x256xf32> -> vector<8x256xf32>
    %c0_5 = arith.constant 0 : index
    %c0_6 = arith.constant 0 : index
    %c0_7 = arith.constant 0 : index
    %5 = vector.load %arg4[%c0_5, %c0_6, %c0_7] : memref<2x8x1xf32, #tpu.memory_space<vmem>>, vector<1x8x1xf32>
    %6 = vector.shape_cast %5 : vector<1x8x1xf32> to vector<8x1xf32>
    %7 = vector.broadcast %6 : vector<8x1xf32> to vector<8x256xf32>
    %8 = arith.addf %4, %7 : vector<8x256xf32>
    %cst_8 = arith.constant 1.000000e-01 : f32
    %9 = vector.broadcast %cst_8 : f32 to vector<8x256xf32>
    %10 = arith.mulf %9, %8 : vector<8x256xf32>
    %11 = arith.maximumf %8, %10 : vector<8x256xf32>
    %c1 = arith.constant 1 : index
    %c0_9 = arith.constant 0 : index
    %c0_10 = arith.constant 0 : index
    %12 = vector.load %arg3[%c1, %c0_9, %c0_10] : memref<2x8x8xf32, #tpu.memory_space<vmem>>, vector<1x8x8xf32>
    %13 = vector.shape_cast %12 : vector<1x8x8xf32> to vector<8x8xf32>
    %cst_11 = arith.constant dense<0.000000e+00> : vector<8x256xf32>
    %14 = tpu.matmul %13, %11, %cst_11 {dimension_numbers = #tpu.dot_dimension_numbers<[1], [0], [0], [1], [0, 0, 1, 1], [], []>} : vector<8x8xf32>, vector<8x256xf32>, vector<8x256xf32> -> vector<8x256xf32>
    %c1_12 = arith.constant 1 : index
    %c0_13 = arith.constant 0 : index
    %c0_14 = arith.constant 0 : index
    %15 = vector.load %arg4[%c1_12, %c0_13, %c0_14] : memref<2x8x1xf32, #tpu.memory_space<vmem>>, vector<1x8x1xf32>
    %16 = vector.shape_cast %15 : vector<1x8x1xf32> to vector<8x1xf32>
    %17 = vector.broadcast %16 : vector<8x1xf32> to vector<8x256xf32>
    %18 = arith.addf %14, %17 : vector<8x256xf32>
    %19 = vector.extract_strided_slice %18 {offsets = [0, 0], sizes = [4, 256], strides = [1, 1]} : vector<8x256xf32> to vector<4x256xf32>
    %20 = vector.extract_strided_slice %18 {offsets = [4, 0], sizes = [4, 256], strides = [1, 1]} : vector<8x256xf32> to vector<4x256xf32>
    %21 = math.cos %20 : vector<4x256xf32>
    %22 = arith.mulf %19, %21 : vector<4x256xf32>
    %c0_15 = arith.constant 0 : index
    %c0_16 = arith.constant 0 : index
    %c0_17 = arith.constant 0 : index
    %23 = vector.load %arg5[%c0_15, %c0_16, %c0_17] : memref<1x4x256xf32, #tpu.memory_space<vmem>>, vector<1x4x256xf32>
    %24 = vector.shape_cast %23 : vector<1x4x256xf32> to vector<4x256xf32>
    %25 = vector.shape_cast %22 : vector<4x256xf32> to vector<1x4x256xf32>
    tpu.vector_store %arg5[%c0_15, %c0_16, %c0_17], %25 {strides = array<i32>} : memref<1x4x256xf32, #tpu.memory_space<vmem>>, vector<1x4x256xf32>,
    %26 = math.sin %20 : vector<4x256xf32>
    %27 = arith.mulf %19, %26 : vector<4x256xf32>
    %c0_18 = arith.constant 0 : index
    %c0_19 = arith.constant 0 : index
    %c0_20 = arith.constant 0 : index
    %28 = vector.load %arg6[%c0_18, %c0_19, %c0_20] : memref<1x4x256xf32, #tpu.memory_space<vmem>>, vector<1x4x256xf32>
    %29 = vector.shape_cast %28 : vector<1x4x256xf32> to vector<4x256xf32>
    %30 = vector.shape_cast %27 : vector<4x256xf32> to vector<1x4x256xf32>
    tpu.vector_store %arg6[%c0_18, %c0_19, %c0_20], %30 {strides = array<i32>} : memref<1x4x256xf32, #tpu.memory_space<vmem>>, vector<1x4x256xf32>,
    return
  }
  func.func @transform_0(%arg0: i32, %arg1: i32) -> (i32, i32, i32) {
    %c0_i32 = arith.constant 0 : i32
    %c0_i32_0 = arith.constant 0 : i32
    return %arg0, %c0_i32, %arg1 : i32, i32, i32
  }
  func.func @transform_1(%arg0: i32, %arg1: i32) -> (i32, i32, i32) {
    %c0_i32 = arith.constant 0 : i32
    %c0_i32_0 = arith.constant 0 : i32
    %c0_i32_1 = arith.constant 0 : i32
    %c0_i32_2 = arith.constant 0 : i32
    return %c0_i32, %c0_i32_0, %c0_i32_1 : i32, i32, i32
  }
  func.func @transform_2(%arg0: i32, %arg1: i32) -> (i32, i32, i32) {
    %c0_i32 = arith.constant 0 : i32
    %c0_i32_0 = arith.constant 0 : i32
    %c0_i32_1 = arith.constant 0 : i32
    %c0_i32_2 = arith.constant 0 : i32
    return %c0_i32, %c0_i32_0, %c0_i32_1 : i32, i32, i32
  }
  func.func @transform_3(%arg0: i32, %arg1: i32) -> (i32, i32, i32) {
    %c0_i32 = arith.constant 0 : i32
    %c0_i32_0 = arith.constant 0 : i32
    return %arg0, %c0_i32, %arg1 : i32, i32, i32
  }
  func.func @transform_4(%arg0: i32, %arg1: i32) -> (i32, i32, i32) {
    %c0_i32 = arith.constant 0 : i32
    %c0_i32_0 = arith.constant 0 : i32
    return %arg0, %c0_i32, %arg1 : i32, i32, i32
  }
}

</mosaic_0001>

<bundles_post_ra>
// kernel: tpu_custom_call.1
= control target key start
LH: loop header
LB: loop body
LE: loop exit
PB: predicated region body
PF: predicated region fallthrough
CT: control target
= control target key end

     0   :  { %10 = vsyncpa [#allocation3], 0  ;;  %s1812_s0 = inlined_call_operand.hbm [shape: f32[2,8,256], index: 0, kind: input, shape index: {}]   ;;  %s1813_s1 = inlined_call_operand.vmem [shape: f32[2,8,8], index: 1, kind: input, shape index: {}]   ;;  %s1814_s2 = inlined_call_operand.vmem [shape: f32[2,8,1], index: 2, kind: input, shape index: {}]   ;;  %s1815_s3 = inlined_call_operand.hbm [shape: f32[2,4,256], index: 3, kind: output, shape index: {0}]   ;;  %s1816_s4 = inlined_call_operand.hbm [shape: f32[2,4,256], index: 4, kind: output, shape index: {1}]  }
   0x1   :  { %12 = vsyncpa [#allocation3 + $0x1], 0 }
   0x2   :  { %13 = vsyncpa [#allocation4], 0 }
   0x3   :  { %15 = vsyncpa [#allocation4 + $0x1], 0 }
   0x4   :  { %16 = vsyncpa [#allocation7], 0 }
   0x5   :  { %18 = vsyncpa [#allocation7 + $0x1], 0  ;;  %s1460_s15 = smov 0   ;;  %s1462_s16 = smov 0  }
   0x6   :  { %s1464_s17 = smov 0   ;;  %s1466_s18 = smov 0  }
   0x7   :  { %s1468_s19 = smov 0   ;;  %s1470_s20 = smov 0  }
   0x8 LB: > { %s1167_s21 = sadd.s32 4294967295, %s1426_s20   ;;  %s1168_s22 = sadd.s32 4294967294, %s1426_s20   ;;  %s1426_s20 = sphi %s1470_s20, %s24_s20   ;;  %s1422_s19 = sphi %s1468_s19, %s1829_s19   ;;  %s1418_s18 = sphi %s1466_s18, %s1828_s18   ;;  %s1414_s17 = sphi %s1464_s17, %s1827_s17   ;;  %s1410_s16 = sphi %s1462_s16, %s1826_s16   ;;  %s1406_s15 = sphi %s1460_s15, %s1825_s15  }
   0x9   : > { %s36_s23 = sadd.s32 1, %s1422_s19  ;;  %s45_s24 = sadd.s32 1, %s1414_s17 }
   0xa   : > { %p38_p0 = scmp.ge.s32.totalorder %s36_s23, 2  ;;  %p52_p1 = scmp.ne.s32.totalorder %s1414_s17, %s1410_s16 }
   0xb   : > { %p53_p2 = scmp.eq.s32.totalorder %s1426_s20, 0  ;;  %p58_p3 = scmp.ne.s32.totalorder %s1410_s16, %s1406_s15 }
   0xc   : > { %s1831_s23 = smov (%p38_p0, %s36_s23), 0  ;;  %p59_p5 = scmp.eq.s32.totalorder %s1167_s21, 0 }
   0xd   : > { %p1501_p4 = por %p53_p2, %p52_p1  ;;  %s40_s26 = ssub.s32 %s1422_s19, %s1831_s23 }
   0xe   : > { %p126_p6 = scmp.eq.s32.totalorder %s1167_s21, 1  ;;  %p43_p7 = scmp.eq.s32.totalorder %s40_s26, 0 }
   0xf   : > { %p1507_p8 = por %p59_p5, %p58_p3  ;;  %p132_p10 = scmp.eq.s32.totalorder %s1168_s22, 1 }
  0x10   : > { %p1511_p9 = por %p126_p6, %p52_p1  ;;  %p1170_p12 = scmp.ge.s32.totalorder %s1426_s20, 2 }
  0x11   : > { %s1516_s29 = scalar_select %p43_p7, %s1414_s17, %s45_s24  }
  0x12   : > { %p1518_p11 = por %p132_p10, %p58_p3  ;;  %p1224_p13 = scmp.lt.s32.totalorder %s1426_s20, 2 }
  0x13   : > { %s186_s5 = sand.u32 1, %s1414_s17   ;;  %s1204_s7 = sshll.u32 %s1422_s19, 4 }
  0x14   : > { %s1171_s6 = sshll.u32 %s186_s5, 4  ;;  %s197_s10 = scalar_lea.hbm %s1812_s0, %s1204_s7 }
  0x15   : > { %s190_s11 = scalar_lea.vmem [#allocation2], %s1171_s6  ;;  %s199_s13 = sshll.u32 %s197_s10, 4  ;;  %s200_s13 = int_to_ptr.hbm [resolvable:$true] %s199_s13 }
  0x16   : > { %s201_s12 = sshll.u32 %s190_s11, 4  ;;  %p1214_p0 = pnand %p1224_p13, %p1501_p4  ;;  %s202_s12 = int_to_ptr.vmem [resolvable:$true] %s201_s12 }
  0x17   : > { %p1174_p1 = scmp.ge.s32.totalorder %s1426_s20, 1  ;;  %p206_p2 = scmp.lt.s32.totalorder %s1426_s20, 3 }
  0x18   : > { %s187_s14 = scalar_lea.sflag [#allocation3], %s186_s5 }
  0x19   : > { %1216 = dma.hbm_to_vmem [thread:$0]  (!%p1214_p0), %s200_s13, 256, %s202_s12, %s187_s14  }
  0x1a   : > { %p207_p3 = pnand %p1174_p1, %p206_p2 }
  0x1b   : > { %s1534_s21 = sand.u32 (!%p207_p3), 1, %s1410_s16  }
  0x1c   : > { %210 = sbr.rel (%p207_p3) target bundleno = 437 (0x1b5), region = 32  ;;  %s1175_s22 = sshll.u32 (!%p207_p3), %s1534_s21, 4 }
  0x1d   : > { %s213_s24 = scalar_lea.sflag (!%p207_p3), [#allocation3], %s1534_s21  ;;  %s216_s26 = scalar_lea.vmem (!%p207_p3), [#allocation2], %s1175_s22 }
  0x21   : > { %1393 = dma.done.wait (%p1507_p8), %s213_s24, 256  }
  0x22   : > { %1395 = vsyncadd (%p1507_p8), %s213_s24, 4294967040  ;;  %v1428_v0 = vmov 0   ;;  %vm259_vm0 = vcmask 64512   ;;  %v250_v1 = vld [vmem:[%s216_s26] sm:$0xff]  ;;  %v251_v2 = vld [vmem:[%s216_s26 + $0x8] sm:$0xff]  ;;  %s1176_s11 = sshll.u32 %s1534_s21, 3 }
  0x23   : > { %1281 = vset.pattern.permute.xlu0 %v1428_v0  ;;  %v252_v3 = vld [vmem:[%s1813_s1] sm:$0xff]  ;;  %278 = vmatpush.msra.mxu0 %v250_v1  ;;  %v1181_v5 = vld [vmem:[%s1814_s2 + $0x8] sm:$0xff]  ;;  %v1429_v40 = vmov 683565275   ;;  %v1430_v42 = vmov 2475754826  }
  0x24   : > { %298 = vmatpush.msra.mxu1 %v251_v2  ;;  %v253_v4 = vld [vmem:[%s1814_s2] sm:$0xff]  ;;  %1178 = vmatmul.msk.f32.vlgmr.msra.gmra.mxu0 %vm259_vm0, %v252_v3  ;;  %v1180_v15 = vld [vmem:[%s1813_s1 + $0x8] sm:$0xff]  ;;  %v1431_v46 = vmov 2131351028   ;;  %v1432_v49 = vmov 2102212464  }
  0x25   : > { %1179 = vmatmul.msk.f32.vlgmr.msra.gmra.mxu1 %vm259_vm0, %v252_v3  ;;  %256 = vperm.xlu0 %1281, %v253_v4   ;;  %v1433_v52 = vmov 920167782   ;;  %v1434_v55 = vmov 1326507024   ;;  %s1205_s12 = sshll.u32 %s1418_s18, 3  ;;  %s239_s25 = scalar_lea.vmem [#allocation5], %s1176_s11 }
  0x26   : > { %s1025_s22 = scalar_lea.hbm %s1815_s3, %s1205_s12  ;;  %s1042_s26 = scalar_lea.hbm %s1816_s4, %s1205_s12 }
  0x27   : > { %s1027_s5 = sshll.u32 %s239_s25, 4  ;;  %s1029_s6 = sshll.u32 %s1025_s22, 4  ;;  %s1028_s5 = int_to_ptr.vmem [resolvable:$true] %s1027_s5  ;;  %s1030_s6 = int_to_ptr.hbm [resolvable:$true] %s1029_s6 }
  0x28   : > { %s1754_s7 = scalar_lea.vmem [#allocation6], %s1176_s11  ;;  %s1046_s8 = sshll.u32 %s1042_s26, 4  ;;  %s1761_s8 = int_to_ptr.hbm [resolvable:$true] %s1046_s8 }
  0x29   : > { %s1044_s27 = sshll.u32 %s1754_s7, 4  ;;  %s1007_s9 = scalar_lea.sflag [#allocation4], %s1534_s21  ;;  %s1759_s27 = int_to_ptr.vmem [resolvable:$true] %s1044_s27 }
  0x2a   : > { %s1326_s10 = sshra.s32 %s1030_s6, 4  ;;  %s1332_s14 = scalar_lea.hbm %s1815_s3, 16  ;;  %s1327_s10 = int_to_ptr.hbm [resolvable:$true] %s1326_s10 }
  0x2b   : > { %s1328_s11 = scalar_lea.hbm %s1327_s10, 8  ;;  %p1333_p7 = scmp.lt.s32.totalorder %s1327_s10, %s1815_s3 }
  0x2c   : > { %p1329_p4 = scmp.ne.s32.totalorder %s1327_s10, %s1328_s11  ;;  %p1334_p8 = scmp.lt.s32.totalorder %s1332_s14, %s1328_s11 }
  0x2d   : > { %313 = vperm.xlu0 %1281, %v1181_v5  }
  0x2e   : > { %p1330_p5 = pnand %p1329_p4, %p1511_p9  ;;  %p1335_p10 = por %p1334_p8, %p1333_p7 }
  0x30   : > { %p1331_p6 = pneg %p1330_p5 }
  0x32   : > { %p1336_p13 = pnand %p1335_p10, %p1331_p6 }
  0x97   : > { %v257_v6 = vpop.permute.xlu0 %256 }
  0x9f   : > { %v314_v16 = vpop.permute.xlu0 %313 }
  0xa1   : > { %v280_v7 = vpop.f32.mrf.mxu0 }
  0xa2   : > { %v300_v8 = vpop.f32.mrf.mxu1  ;;  %v281_v9 = vadd.f32 %v280_v7, %v257_v6 }
  0xa3   : > { %v301_v10 = vadd.f32 %v300_v8, %v257_v6 }
  0xa4   : > { %v303_v11 = vmul.f32 0.1, %v281_v9 }
  0xa5   : > { %v304_v12 = vmul.f32 0.1, %v301_v10 }
  0xa6   : > { %v305_v13 = vmax.f32 %v281_v9, %v303_v11 }
  0xa7   : > { %v306_v14 = vmax.f32 %v301_v10, %v304_v12 }
  0xa8   : > { %334 = vmatpush.msra.mxu2 %v305_v13 }
  0xa9   : > { %354 = vmatpush.msra.mxu3 %v306_v14  ;;  %1182 = vmatmul.msk.f32.vlgmr.msra.gmra.mxu2 %vm259_vm0, %v1180_v15 }
  0xaa   : > { %1183 = vmatmul.msk.f32.vlgmr.msra.gmra.mxu3 %vm259_vm0, %v1180_v15 }
 0x12c   : > { %v336_v17 = vpop.f32.mrf.mxu2 }
 0x12d   : > { %v356_v18 = vpop.f32.mrf.mxu3  ;;  %v1559_v19 = vadd.f32 %v336_v17, %v314_v16 }
 0x12e   : > { %v1561_v20 = vadd.f32 %v356_v18, %v314_v16 }
 0x12f   : > { %v362_v21 = vand.u32 2139095040, %v1559_v19  ;;  %v359_v25 = vand.u32 2147483647, %v1559_v19 }
 0x130   : > { %v516_v22 = vand.u32 2139095040, %v1561_v20  ;;  %v513_v27 = vand.u32 2147483647, %v1561_v20 }
 0x131   : > { %v363_v23 = vshrl.u32 %v362_v21, 23  ;;  %v366_v31 = vand.u32 8388607, %v359_v25 }
 0x132   : > { %v517_v24 = vshrl.u32 %v516_v22, 23  ;;  %v520_v32 = vand.u32 8388607, %v513_v27 }
 0x133   : > { %v1184_v26 = vadd.s32 4294967169, %v363_v23  ;;  %v367_v36 = vor.u32 8388608, %v366_v31 }
 0x134   : > { %v1187_v28 = vadd.s32 4294967169, %v517_v24  ;;  %v521_v38 = vor.u32 8388608, %v520_v32 }
 0x135   : > { %v369_v29 = vadd.s32 1, %v1184_v26  ;;  %v1578_v60 = vshll.u32 %v367_v36, 8 }
 0x136   : > { %v523_v30 = vadd.s32 1, %v1187_v28  ;;  %v1588_v2 = vshll.u32 %v521_v38, 8 }
 0x137   : > { %vm370_vm1 = vcmp.gt.s32.totalorder %v369_v29, 0  ;;  %v408_v9 = vand.u32 65535, %v1578_v60  ;;  %v409_v15 = vshrl.u32 %v1578_v60, 16 }
 0x138   : > { %v371_v33 = vsel %vm370_vm1, %v369_v29, 0  ;;  %vm524_vm2 = vcmp.gt.s32.totalorder %v523_v30, 0  ;;  %v1615_v18 = vand.u32 65535, %v1588_v2  ;;  %v1620_v24 = vshrl.u32 %v1588_v2, 16 }
 0x139   : > { %v373_v34 = vand.u32 31, %v371_v33  ;;  %v525_v35 = vsel %vm524_vm2, %v523_v30, 0  ;;  %v1571_v39 = vshrl.u32 %v371_v33, 5 }
 0x13a   : > { %v527_v44 = vand.u32 31, %v525_v35  ;;  %v1623_v29 = vshrl.u32 %v525_v35, 5 }
 0x13b   : > { %v374_v37 = vsub.s32 32, %v373_v34  ;;  %v376_v41 = vshll.u32 %v1429_v40, %v373_v34  ;;  %v379_v43 = vshll.u32 %v1430_v42, %v373_v34  ;;  %v382_v48 = vshll.u32 %v1431_v46, %v373_v34 }
 0x13c   : > { %v385_v51 = vshll.u32 %v1432_v49, %v373_v34  ;;  %v388_v54 = vshll.u32 %v1433_v52, %v373_v34  ;;  %vm391_vm3 = vcmp.lt.s32.totalorder %v1571_v39, 1  ;;  %v1581_v63 = vsub.s32 32, %v527_v44 }
 0x13d   : > { %v377_v45 = vshrl.u32 %v1430_v42, %v374_v37  ;;  %v380_v47 = vshrl.u32 %v1431_v46, %v374_v37  ;;  %v383_v50 = vshrl.u32 %v1432_v49, %v374_v37  ;;  %v386_v53 = vshrl.u32 %v1433_v52, %v374_v37 }
 0x13e   : > { %v389_v56 = vshrl.u32 %v1434_v55, %v374_v37  ;;  %vm394_vm4 = vcmp.lt.s32.totalorder %v1571_v39, 4  ;;  %vm393_vm5 = vcmp.lt.s32.totalorder %v1571_v39, 3  ;;  %vm392_vm6 = vcmp.lt.s32.totalorder %v1571_v39, 2 }
 0x13f   : > { %v378_v57 = vor.u32 %v377_v45, %v376_v41  ;;  %v1574_v58 = vor.u32 %v380_v47, %v379_v43  ;;  %v1576_v59 = vor.u32 %v383_v50, %v382_v48  ;;  %v387_v61 = vor.u32 %v386_v53, %v385_v51 }
 0x140   : > { %v390_v62 = vor.u32 %v389_v56, %v388_v54  ;;  %v531_v10 = vshrl.u32 %v1430_v42, %v1581_v63  ;;  %v534_v14 = vshrl.u32 %v1431_v46, %v1581_v63  ;;  %v530_v16 = vshll.u32 %v1429_v40, %v527_v44 }
 0x141   : > { %v403_v1 = vsel %vm391_vm3, %v1574_v58, %v1576_v59  ;;  %v399_v3 = vsel %vm391_vm3, %v378_v57, %v1574_v58  ;;  %v400_v4 = vsel %vm394_vm4, %v387_v61, 920167782  ;;  %v537_v17 = vshrl.u32 %v1432_v49, %v1581_v63 }
 0x142   : > { %v404_v5 = vsel %vm394_vm4, %v390_v62, 1326507024  ;;  %v401_v6 = vsel %vm393_vm5, %v1576_v59, %v400_v4  ;;  %v533_v22 = vshll.u32 %v1430_v42, %v527_v44  ;;  %v536_v23 = vshll.u32 %v1431_v46, %v527_v44 }
 0x143   : > { %v405_v7 = vsel %vm393_vm5, %v387_v61, %v404_v5  ;;  %v402_v11 = vsel %vm392_vm6, %v399_v3, %v401_v6  ;;  %v375_v26 = vshrl.u32 %v1429_v40, %v374_v37  ;;  %v1625_v30 = vor.u32 %v531_v10, %v530_v16 }
 0x144   : > { %v406_v8 = vsel %vm392_vm6, %v403_v1, %v405_v7  ;;  %v433_v28 = vshrl.u32 %v402_v11, 16  ;;  %v1628_v33 = vor.u32 %v534_v14, %v533_v22  ;;  %v1630_v34 = vor.u32 %v537_v17, %v536_v23 }
 0x145   : > { %v410_v12 = vand.u32 65535, %v406_v8  ;;  %v411_v13 = vshrl.u32 %v406_v8, 16  ;;  %v539_v36 = vshll.u32 %v1432_v49, %v527_v44  ;;  %v540_v38 = vshrl.u32 %v1433_v52, %v1581_v63 }
 0x146   : > { %v542_v41 = vshll.u32 %v1433_v52, %v527_v44  ;;  %v543_v42 = vshrl.u32 %v1434_v55, %v1581_v63  ;;  %v1636_v37 = vsel %vm391_vm3, %v375_v26, %v378_v57  ;;  %v432_v45 = vand.u32 65535, %v402_v11 }
 0x147   : > { %v1617_v21 = vmul.u32 %v411_v13, %v408_v9  ;;  %v412_v31 = vmul.u32 %v410_v12, %v408_v9  ;;  %v1638_v35 = vmul.u32 %v410_v12, %v409_v15  ;;  %v415_v43 = vmul.u32 %v411_v13, %v409_v15 }
 0x148   : > { %v541_v46 = vor.u32 %v540_v38, %v539_v36  ;;  %v544_v47 = vor.u32 %v543_v42, %v542_v41  ;;  %vm545_vm8 = vcmp.lt.s32.totalorder %v1623_v29, 1  ;;  %v435_v49 = vmul.u32 %v433_v28, %v408_v9 }
 0x149   : > { %v416_v32 = vshll.u32 %v1617_v21, 16  ;;  %vm548_vm9 = vcmp.lt.s32.totalorder %v1623_v29, 4  ;;  %v553_v44 = vsel %vm545_vm8, %v1625_v30, %v1628_v33  ;;  %vm547_vm10 = vcmp.lt.s32.totalorder %v1623_v29, 3 }
 0x14a   : > { %v554_v50 = vsel %vm548_vm9, %v541_v46, 920167782  ;;  %v557_v51 = vsel %vm545_vm8, %v1628_v33, %v1630_v34  ;;  %v558_v52 = vsel %vm548_vm9, %v544_v47, 1326507024  ;;  %vm546_vm11 = vcmp.lt.s32.totalorder %v1623_v29, 2 }
 0x14b   : > { %vm420_vm7 = vc.u32 %v412_v31, %v416_v32  ;;  %v422_v48 = vadd.s32 %v416_v32, %v412_v31  ;;  %v555_v54 = vsel %vm547_vm10, %v1630_v34, %v554_v50  ;;  %v559_v55 = vsel %vm547_vm10, %v541_v46, %v558_v52 }
 0x14c   : > { %v421_v53 = vsel %vm420_vm7, 1, %v1428_v0  ;;  %v418_v56 = vshll.u32 %v1638_v35, 16  ;;  %v436_v57 = vmul.u32 %v432_v45, %v409_v15  ;;  %v556_v61 = vsel %vm546_vm11, %v553_v44, %v555_v54 }
 0x14d   : > { %v560_v62 = vsel %vm546_vm11, %v557_v51, %v559_v55  ;;  %v396_v1 = vsel %vm394_vm4, %v1576_v59, 2102212464  ;;  %v434_v3 = vmul.u32 %v432_v45, %v408_v9  ;;  %v423_v6 = vadd.s32 %v421_v53, %v415_v43 }
 0x14e   : > { %v564_v4 = vand.u32 65535, %v560_v62  ;;  %v565_v5 = vshrl.u32 %v560_v62, 16  ;;  %v587_v7 = vshrl.u32 %v556_v61, 16  ;;  %vm424_vm12 = vc.u32 %v422_v48, %v418_v56 }
 0x14f   : > { %v438_v8 = vshll.u32 %v435_v49, 16  ;;  %v437_v10 = vmul.u32 %v433_v28, %v409_v15  ;;  %v417_v13 = vshrl.u32 %v1617_v21, 16  ;;  %v586_v14 = vand.u32 65535, %v556_v61 }
 0x150   : > { %v567_v11 = vmul.u32 %v565_v5, %v1615_v18  ;;  %v568_v12 = vmul.u32 %v564_v4, %v1620_v24  ;;  %v419_v16 = vshrl.u32 %v1638_v35, 16  ;;  %v439_v17 = vshrl.u32 %v435_v49, 16 }
 0x151   : > { %v440_v22 = vshll.u32 %v436_v57, 16  ;;  %v566_v59 = vmul.u32 %v564_v4, %v1615_v18  ;;  %v569_v9 = vmul.u32 %v565_v5, %v1620_v24  ;;  %v425_v26 = vsel %vm424_vm12, 1, %v1428_v0 }
 0x152   : > { %v570_v23 = vshll.u32 %v567_v11, 16  ;;  %v589_v15 = vmul.u32 %v587_v7, %v1615_v18  ;;  %v427_v28 = vadd.s32 %v425_v26, %v423_v6  ;;  %vm442_vm13 = vc.u32 %v434_v3, %v438_v8 }
 0x153   : > { %v444_v31 = vadd.s32 %v438_v8, %v434_v3  ;;  %v572_v32 = vshll.u32 %v568_v12, 16  ;;  %v443_v36 = vsel %vm442_vm13, 1, %v1428_v0  ;;  %v590_v43 = vmul.u32 %v586_v14, %v1620_v24 }
 0x154   : > { %vm574_vm14 = vc.u32 %v566_v59, %v570_v23  ;;  %v576_v21 = vadd.s32 %v570_v23, %v566_v59  ;;  %v428_v41 = vadd.s32 %v427_v28, %v417_v13  ;;  %v445_v42 = vadd.s32 %v443_v36, %v437_v10 }
 0x155   : > { %v575_v38 = vsel %vm574_vm14, 1, %v1428_v0  ;;  %vm446_vm15 = vc.u32 %v444_v31, %v440_v22  ;;  %v588_v46 = vmul.u32 %v586_v14, %v1615_v18  ;;  %v592_v49 = vshll.u32 %v589_v15, 16 }
 0x156   : > { %v577_v35 = vadd.s32 %v575_v38, %v569_v9  ;;  %v447_v45 = vsel %vm446_vm15, 1, %v1428_v0  ;;  %vm578_vm0 = vc.u32 %v576_v21, %v572_v32  ;;  %v397_v44 = vsel %vm393_vm5, %v1574_v58, %v396_v1 }
 0x157   : > { %v449_v47 = vadd.s32 %v447_v45, %v445_v42  ;;  %v579_v48 = vsel %vm578_vm0, 1, %v1428_v0  ;;  %v591_v50 = vmul.u32 %v587_v7, %v1620_v24  ;;  %v429_v51 = vadd.s32 %v428_v41, %v419_v16 }
 0x158   : > { %v581_v52 = vadd.s32 %v579_v48, %v577_v35  ;;  %v441_v53 = vshrl.u32 %v436_v57, 16  ;;  %v571_v55 = vshrl.u32 %v567_v11, 16  ;;  %vm596_vm1 = vc.u32 %v588_v46, %v592_v49 }
 0x159   : > { %v450_v54 = vadd.s32 %v449_v47, %v439_v17  ;;  %v448_v56 = vadd.s32 %v444_v31, %v440_v22  ;;  %v594_v61 = vshll.u32 %v590_v43, 16  ;;  %v597_v18 = vsel %vm596_vm1, 1, %v1428_v0 }
 0x15a   : > { %v598_v62 = vadd.s32 %v592_v49, %v588_v46  ;;  %v398_v3 = vsel %vm392_vm6, %v1636_v37, %v397_v44  ;;  %v582_v5 = vadd.s32 %v581_v52, %v571_v55  ;;  %v599_v58 = vadd.s32 %v597_v18, %v591_v50 }
 0x15b   : > { %v451_v4 = vadd.s32 %v450_v54, %v441_v53  ;;  %v550_v24 = vsel %vm548_vm9, %v1630_v34, 2102212464  ;;  %vm454_vm2 = vc.u32 %v429_v51, %v448_v56  ;;  %v529_v57 = vshrl.u32 %v1429_v40, %v1581_v63 }
 0x15c   : > { %vm600_vm3 = vc.u32 %v598_v62, %v594_v61  ;;  %v573_v6 = vshrl.u32 %v568_v12, 16  ;;  %v452_v8 = vmul.u32 %v1578_v60, %v398_v3  ;;  %v593_v39 = vshrl.u32 %v589_v15, 16 }
 0x15d   : > { %v455_v1 = vadd.s32 1, %v451_v4  ;;  %v601_v7 = vsel %vm600_vm3, 1, %v1428_v0  ;;  %v549_v10 = vsel %vm545_vm8, %v529_v57, %v1625_v30  ;;  %v551_v34 = vsel %vm547_vm10, %v1628_v33, %v550_v24 }
 0x15e   : > { %v603_v37 = vadd.s32 %v601_v7, %v599_v58  ;;  %v583_v13 = vadd.s32 %v582_v5, %v573_v6  ;;  %v595_v40 = vshrl.u32 %v590_v43, 16  ;;  %v602_v12 = vadd.s32 %v598_v62, %v594_v61 }
 0x15f   : > { %v456_v11 = vsel %vm454_vm2, %v455_v1, %v451_v4  ;;  %v552_v0 = vsel %vm546_vm11, %v549_v10, %v551_v34  ;;  %vm361_vm9 = vcmp.lt.s32.totalorder %v1559_v19, 0  ;;  %vm1714_vm10 = vcmp.le.f32.partialorder %v359_v25, 0.7853982 }
 0x160   : > { %v457_v14 = vadd.s32 %v456_v11, %v452_v8  ;;  %v604_v63 = vadd.s32 %v603_v37, %v593_v39  ;;  %vm608_vm4 = vc.u32 %v583_v13, %v602_v12  ;;  %v606_v30 = vmul.u32 %v1588_v2, %v552_v0 }
 0x161   : > { %v453_v2 = vadd.s32 %v448_v56, %v429_v51  ;;  %v607_v54 = vadd.s32 %v602_v12, %v583_v13  ;;  %vm515_vm11 = vcmp.lt.s32.totalorder %v1561_v20, 0  ;;  %vm1724_vm12 = vcmp.le.f32.partialorder %v513_v27, 0.7853982 }
 0x162   : > { %v458_v60 = vadd.s32 536870912, %v457_v14  ;;  %v605_v16 = vadd.s32 %v604_v63, %v595_v40  ;;  %vm502_vm3 = vweird.f32 %v1559_v19 }
 0x164   : > { %v459_v17 = vshrl.u32 %v458_v60, 30  ;;  %v609_v22 = vadd.s32 1, %v605_v16 }
 0x166   : > { %v460_v59 = vshll.u32 %v459_v17, 30  ;;  %v610_v9 = vsel %vm608_vm4, %v609_v22, %v605_v16  ;;  %v483_v7 = vsub.s32 4, %v459_v17 }
 0x167   : > { %v611_v23 = vadd.s32 %v610_v9, %v606_v30 }
 0x168   : > { %v461_v33 = vsub.s32 %v457_v14, %v460_v59  ;;  %v484_v14 = vsel %vm361_vm9, %v483_v7, %v459_v17 }
 0x169   : > { %v612_v26 = vadd.s32 536870912, %v611_v23  ;;  %v486_v16 = vsel %vm1714_vm10, 0, %v484_v14 }
 0x16a   : > { %vm462_vm5 = vcmp.lt.s32.totalorder %v461_v33, 0  ;;  %v463_v15 = vsub.s32 0, %v461_v33 }
 0x16b   : > { %v1708_v28 = vshrl.u32 %v612_v26, 30 }
 0x16c   : > { %v464_v31 = vsel %vm462_vm5, %v463_v15, %v461_v33  ;;  %v826_v15 = vadd.s32 3, %v486_v16 }
 0x16d   : > { %v465_v32 = vclz %v464_v31  ;;  %v614_v29 = vshll.u32 %v1708_v28, 30  ;;  %v637_v60 = vsub.s32 4, %v1708_v28 }
 0x16f   : > { %v1185_v21 = vadd.s32 4294967294, %v465_v32  ;;  %v615_v36 = vsub.s32 %v611_v23, %v614_v29  ;;  %v638_v27 = vsel %vm515_vm11, %v637_v60, %v1708_v28 }
 0x171   : > { %vm1186_vm6 = vcmp.lt.s32.totalorder %v1185_v21, 0  ;;  %vm616_vm7 = vcmp.lt.s32.totalorder %v615_v36, 0  ;;  %v617_v38 = vsub.s32 0, %v615_v36 }
 0x172   : > { %v468_v41 = vsel %vm1186_vm6, 0, %v1185_v21 }
 0x173   : > { %v469_v42 = vsub.s32 32, %v468_v41  ;;  %v473_v35 = vsub.s32 4294967266, %v468_v41  ;;  %v618_v43 = vsel %vm616_vm7, %v617_v38, %v615_v36  ;;  %v470_v46 = vshll.u32 %v461_v33, %v468_v41 }
 0x174   : > { %v619_v45 = vclz %v618_v43  ;;  %v640_v41 = vsel %vm1724_vm12, 0, %v638_v27  ;;  %v827_v43 = vand.u32 3, %v826_v15 }
 0x175   : > { %v471_v47 = vshrl.u32 %v453_v2, %v469_v42  ;;  %v474_v48 = vadd.s32 127, %v473_v35  ;;  %v503_v2 = vand.u32 3, %v486_v16  ;;  %v981_v28 = vadd.s32 3, %v640_v41 }
 0x176   : > { %v1188_v49 = vadd.s32 4294967294, %v619_v45  ;;  %vm829_vm14 = vcmp.eq.s32.totalorder %v827_v43, 0  ;;  %vm832_vm0 = vcmp.eq.s32.totalorder %v827_v43, 2  ;;  %vm828_vm2 = vcmp.lt.s32.totalorder %v827_v43, 2 }
 0x177   : > { %v472_v44 = vor.u32 %v471_v47, %v470_v46  ;;  %v475_v50 = vshll.u32 %v474_v48, 23  ;;  %vm505_vm13 = vcmp.eq.s32.totalorder %v503_v2, 0  ;;  %vm508_vm15 = vcmp.eq.s32.totalorder %v503_v2, 2 }
 0x178   : > { %vm1189_vm8 = vcmp.lt.s32.totalorder %v1188_v49, 0  ;;  %vm504_vm1 = vcmp.lt.s32.totalorder %v503_v2, 2 }
 0x179   : > { %v476_v52 = vor.u32 4788187, %v475_v50  ;;  %v622_v53 = vsel %vm1189_vm8, 0, %v1188_v49  ;;  %v479_v62 = vcvt.s32.f32 %v472_v44 }
 0x17a   : > { %v623_v55 = vsub.s32 32, %v622_v53  ;;  %v627_v61 = vsub.s32 4294967266, %v622_v53  ;;  %v624_v3 = vshll.u32 %v615_v36, %v622_v53  ;;  %v657_v53 = vand.u32 3, %v640_v41 }
 0x17b   : > { %v477_v18 = vand.u32 2147483647, %v476_v52 }
 0x17c   : > { %v625_v51 = vshrl.u32 %v607_v54, %v623_v55  ;;  %v628_v56 = vadd.s32 127, %v627_v61  ;;  %vm658_vm4 = vcmp.lt.s32.totalorder %v657_v53, 2  ;;  %vm659_vm5 = vcmp.eq.s32.totalorder %v657_v53, 0 }
 0x17d   : > { %v480_v4 = vmul.f32 %v479_v62, %v477_v18  ;;  %v982_v18 = vand.u32 3, %v981_v28  ;;  %vm662_vm6 = vcmp.eq.s32.totalorder %v657_v53, 2 }
 0x17e   : > { %v626_v5 = vor.u32 %v625_v51, %v624_v3  ;;  %v629_v58 = vshll.u32 %v628_v56, 23 }
 0x17f   : > { %v481_v24 = vxor.u32 2147483648, %v480_v4  ;;  %vm983_vm7 = vcmp.lt.s32.totalorder %v982_v18, 2  ;;  %vm984_vm8 = vcmp.eq.s32.totalorder %v982_v18, 0 }
 0x180   : > { %v630_v57 = vor.u32 4788187, %v629_v58  ;;  %v633_v37 = vcvt.s32.f32 %v626_v5 }
 0x181   : > { %v482_v6 = vsel %vm361_vm9, %v481_v24, %v480_v4  ;;  %vm987_vm9 = vcmp.eq.s32.totalorder %v982_v18, 2 }
 0x182   : > { %v485_v8 = vsel %vm1714_vm10, %v1559_v19, %v482_v6  ;;  %v631_v39 = vand.u32 2147483647, %v630_v57  ;;  %vm656_vm10 = vweird.f32 %v1561_v20 }
 0x183   : > { %v487_v10 = vmul.f32 %v485_v8, %v485_v8 }
 0x184   : > { %v634_v34 = vmul.f32 %v633_v37, %v631_v39 }
 0x185   : > { %v488_v11 = vmul.f32 -0.001358992, %v487_v10  ;;  %v495_v13 = vmul.f32 -0.00019511016, %v487_v10 }
 0x186   : > { %v635_v40 = vxor.u32 2147483648, %v634_v34 }
 0x187   : > { %v489_v25 = vadd.f32 0.041655596, %v488_v11  ;;  %v496_v63 = vadd.f32 0.008332121, %v495_v13 }
 0x188   : > { %v636_v0 = vsel %vm515_vm11, %v635_v40, %v634_v34  ;;  %vm678_vm11 = vcmask 1043456  }
 0x189   : > { %v490_v22 = vmul.f32 %v489_v25, %v487_v10  ;;  %v497_v30 = vmul.f32 %v496_v63, %v487_v10  ;;  %v639_v17 = vsel %vm1724_vm12, %v1561_v20, %v636_v0 }
 0x18a   : > { %v641_v59 = vmul.f32 %v639_v17, %v639_v17 }
 0x18b   : > { %v491_v9 = vadd.f32 -0.4999988, %v490_v22  ;;  %v498_v23 = vadd.f32 -0.16666654, %v497_v30 }
 0x18c   : > { %v642_v33 = vmul.f32 -0.001358992, %v641_v59  ;;  %v649_v26 = vmul.f32 -0.00019511016, %v641_v59 }
 0x18d   : > { %v492_v31 = vmul.f32 %v491_v9, %v487_v10  ;;  %v499_v32 = vmul.f32 %v498_v23, %v487_v10 }
 0x18e   : > { %v643_v29 = vadd.f32 0.041655596, %v642_v33  ;;  %v650_v21 = vadd.f32 0.008332121, %v649_v26 }
 0x18f   : > { %v493_v36 = vadd.f32 1.0, %v492_v31  ;;  %v500_v38 = vadd.f32 1.0, %v499_v32 }
 0x190   : > { %v644_v42 = vmul.f32 %v643_v29, %v641_v59  ;;  %v651_v35 = vmul.f32 %v650_v21, %v641_v59 }
 0x191   : > { %v501_v45 = vmul.f32 %v500_v38, %v485_v8  ;;  %v509_v49 = vxor.u32 2147483648, %v493_v36 }
 0x192   : > { %v645_v46 = vadd.f32 -0.4999988, %v644_v42  ;;  %v652_v47 = vadd.f32 -0.16666654, %v651_v35 }
 0x193   : > { %v506_v48 = vxor.u32 2147483648, %v501_v45  ;;  %v510_v62 = vsel %vm508_vm15, %v509_v49, %v501_v45  ;;  %v834_v3 = vsel %vm832_vm0, %v509_v49, %v501_v45 }
 0x194   : > { %v646_v44 = vmul.f32 %v645_v46, %v641_v59  ;;  %v653_v50 = vmul.f32 %v652_v47, %v641_v59 }
 0x195   : > { %v507_v52 = vsel %vm505_vm13, %v493_v36, %v506_v48  ;;  %v831_v54 = vsel %vm829_vm14, %v493_v36, %v506_v48 }
 0x196   : > { %v647_v55 = vadd.f32 1.0, %v646_v44  ;;  %v654_v61 = vadd.f32 1.0, %v653_v50  ;;  %v511_v51 = vsel %vm504_vm1, %v507_v52, %v510_v62  ;;  %v835_v5 = vsel %vm828_vm2, %v831_v54, %v834_v3 }
 0x197   : > { %v512_v24 = vsel %vm502_vm3, nan, %v511_v51  ;;  %v836_v57 = vsel %vm502_vm3, nan, %v835_v5 }
 0x198   : > { %v655_v56 = vmul.f32 %v654_v61, %v639_v17  ;;  %v663_v4 = vxor.u32 2147483648, %v647_v55  ;;  %v669_v11 = vrot.slane %v512_v24, 4  ;;  %v994_v14 = vrot.slane %v836_v57, 4 }
 0x19a   : > { %v660_v58 = vxor.u32 2147483648, %v655_v56  ;;  %v664_v6 = vsel %vm662_vm6, %v663_v4, %v655_v56  ;;  %v989_v8 = vsel %vm987_vm9, %v663_v4, %v655_v56  ;;  %v673_v12 = vmul.f32 %v669_v11, %v1559_v19 }
 0x19b   : > { %v998_v60 = vmul.f32 %v994_v14, %v1559_v19 }
 0x19c   : > { %v661_v1 = vsel %vm659_vm5, %v647_v55, %v660_v58  ;;  %v986_v7 = vsel %vm984_vm8, %v647_v55, %v660_v58 }
 0x19d   : > { %v665_v39 = vsel %vm658_vm4, %v661_v1, %v664_v6  ;;  %v990_v37 = vsel %vm983_vm7, %v986_v7, %v989_v8 }
 0x19e   : > { %v666_v10 = vsel %vm656_vm10, nan, %v665_v39  ;;  %v991_v34 = vsel %vm656_vm10, nan, %v990_v37 }
 0x19f   : > { %v670_v13 = vrot.slane %v666_v10, 4  ;;  %v995_v40 = vrot.slane %v991_v34, 4 }
 0x1a1   : > { %v674_v25 = vmul.f32 %v670_v13, %v1561_v20  ;;  %v999_v63 = vmul.f32 %v995_v40, %v1561_v20 }
 0x1a3   : > { %v677_v0 = vrot.slane %v674_v25, 4  ;;  %v1002_v16 = vrot.slane %v999_v63, 4 }
 0x1a5   : > { %v679_v22 = vsel %vm678_vm11, %v673_v12, %v677_v0  ;;  %v1003_v30 = vsel %vm678_vm11, %v998_v60, %v1002_v16 }
 0x1a6   : > { %681 = vst [vmem:[%s239_s25] sm:$0xff] %v679_v22 }
 0x1a7   : > { %1339 = shalt.err (!%p1336_p13)
}
 0x1a8   : > { %1209 = dma.vmem_to_hbm [thread:$0]  (%p1511_p9), %s1028_s5, 128, %s1030_s6, %s1007_s9   ;;  %1005 = vst [vmem:[%s1754_s7] sm:$0xff] %v1003_v30 }
 0x1a9   : > { %s1012_s24 = scalar_lea.sflag [#allocation7], %s1534_s21  ;;  %s1354_s26 = sshra.s32 %s1761_s8, 4  ;;  %s1355_s26 = int_to_ptr.hbm [resolvable:$true] %s1354_s26 }
 0x1aa   : > { %s1356_s25 = scalar_lea.hbm %s1355_s26, 8  ;;  %s1360_s12 = scalar_lea.hbm %s1816_s4, 16 }
 0x1ab   : > { %p1357_p0 = scmp.ne.s32.totalorder %s1355_s26, %s1356_s25  ;;  %p1361_p3 = scmp.lt.s32.totalorder %s1355_s26, %s1816_s4 }
 0x1ac   : > { %p1362_p4 = scmp.lt.s32.totalorder %s1360_s12, %s1356_s25 }
 0x1ad   : > { %p1358_p1 = pnand %p1357_p0, %p1511_p9 }
 0x1ae   : > { %p1363_p5 = por %p1362_p4, %p1361_p3 }
 0x1af   : > { %p1359_p2 = pneg %p1358_p1 }
 0x1b1   : > { %p1364_p6 = pnand %p1363_p5, %p1359_p2 }
 0x1b3   : > { %1367 = shalt.err (!%p1364_p6)
}
 0x1b4   : > { %1210 = dma.vmem_to_hbm [thread:$0]  (%p1511_p9), %s1759_s27, 128, %s1761_s8, %s1012_s24  }
 0x1b5 PF: > { %s1058_s21 = sand.u32 1, %s1406_s15   ;;  %p1218_p7 = pnand %p1170_p12, %p1518_p11 }
 0x1b6   : > { %s1059_s5 = scalar_lea.sflag [#allocation4], %s1058_s21 }
 0x1b7   : > { %p1219_p8 = pneg %p1218_p7 }
 0x1b9   : > { %1397 = dma.done.wait (%p1219_p8), %s1059_s5, 128  }
 0x1ba   : > { %1399 = vsyncadd (%p1219_p8), %s1059_s5, 4294967168  ;;  %s1069_s6 = scalar_lea.sflag [#allocation7], %s1058_s21 }
 0x1bb   : > { %1401 = dma.done.wait (%p1219_p8), %s1069_s6, 128  }
 0x1bc   : > { %1403 = vsyncadd (%p1219_p8), %s1069_s6, 4294967168  ;;  %s24_s20 = sadd.s32 1, %s1426_s20   ;;  %s1825_s15 = smov %s1410_s16 }
 0x1bd   : > { %p21_p10 = scmp.ge.s32.totalorder %s24_s20, 4   ;;  %s1826_s16 = smov %s1414_s17 }
 0x1be   : > { %s1827_s17 = smov %s1516_s29  ;;  %s1828_s18 = smov %s1422_s19 }
 0x1bf   : > { %s1829_s19 = smov %s1831_s23  ;;  %23 = sbr.rel (!%p21_p10) target bundleno = 8 (0x8), region = 96 }
 0x1c4   :  { %1075 = vsyncpa [#allocation3], 1 }
 0x1c5   :  { %1077 = vsyncpa [#allocation3 + $0x1], 1 }
 0x1c6   :  { %1078 = vsyncpa [#allocation4], 1 }
 0x1c7   :  { %1080 = vsyncpa [#allocation4 + $0x1], 1 }
 0x1c8   :  { %1081 = vsyncpa [#allocation7], 1 }
 0x1c9   :  { %1083 = vsyncpa [#allocation7 + $0x1], 1 }

</bundles_post_ra>
